<compile_context>
chip_gen: v6e
topology: v6e:2x2x1
jax: 0.10.0
libtpu: 0.0.40
codegen_flags: <defaults>
</compile_context>

<pallas_src>
import functools
import math

import jax
import jax.numpy as jnp
from jax import lax
from jax.experimental import pallas as pl
from jax.experimental.pallas import tpu as pltpu


# log(clip(one_hot, 1e-4, 1.0)) is log(1e-4) everywhere except 0 at the true class.
_NEG_LOG_1E4 = -math.log(1e-4)  # ~9.2103


def _nce_rce_kernel(pred_ref, labels_ref, out_ref, *, a_scale, b_scale, n_rows, row_tile):
    i = pl.program_id(0)
    x = pred_ref[...].astype(jnp.float32)      # [TN, C]; upcast in-register
    labels = labels_ref[...]                   # [TN, 1] int32
    tn, c = x.shape

    needs_mask = (n_rows % row_tile) != 0      # trace-time decision
    if needs_mask:
        row_ids = i * row_tile + lax.broadcasted_iota(jnp.int32, (tn, 1), 0)
        row_valid = row_ids < n_rows
        x = jnp.where(row_valid, x, 0.0)       # keep padded rows finite (before exp/log)

    class_ids = lax.broadcasted_iota(jnp.int32, (1, c), 1)
    true_mask = labels == class_ids            # bool [TN, C]; no f32 one-hot materialized

    # ---- row statistics (log-sum-exp algebra; no [TN, C] logp tile) ----
    m = jnp.max(x, axis=1, keepdims=True)                                   # [TN, 1]
    sum_x = jnp.sum(x, axis=1, keepdims=True)                               # [TN, 1]
    x_true = jnp.sum(jnp.where(true_mask, x, 0.0), axis=1, keepdims=True)   # [TN, 1]
    exp_shifted = jnp.exp(x - m)               # the only full-tile transcendental
    sum_exp = jnp.sum(exp_shifted, axis=1, keepdims=True)                   # [TN, 1]
    lse = m + jnp.log(sum_exp)                                              # [TN, 1]

    # ---- NormalizedCrossEntropy:  (-logp_true) / (-sum(logp)) ----
    #   -logp_true = lse - x_true ;  -sum(logp) = C*lse - sum_x
    num = lse - x_true
    den = float(c) * lse - sum_x
    nce_row = num / den                        # [TN, 1]; exact divide (tolerance 1e-5)

    # ---- ReverseCrossEntropy:  -sum(clip(p,1e-7,1) * log(clip(onehot,1e-4,1))) ----
    #   = -log(1e-4) * (sum_j clip(p_j) - clip(p_true))
    # sum_j clip(p_j) computed without forming the [TN,C] softmax tile; the upper
    # clip at 1.0 is a no-op because inv_sum is an exact reciprocal (p_j <= 1).
    inv_sum = pl.reciprocal(sum_exp, approx=False)
    sum_p = jnp.sum(jnp.maximum(exp_shifted, 1e-7 * sum_exp),
                    axis=1, keepdims=True) * inv_sum                        # [TN, 1]
    p_true = jnp.maximum(jnp.exp(-num), 1e-7)  # exp(logp_true), reuses `num`; per-row EUP op
    rce_row = _NEG_LOG_1E4 * (sum_p - p_true)  # [TN, 1]

    if needs_mask:
        nce_row = jnp.where(row_valid, nce_row, 0.0)
        rce_row = jnp.where(row_valid, rce_row, 0.0)

    # alpha/N, beta/N folded at trace time -> one scalar partial per block.
    nce_part = jnp.sum(nce_row, axis=0, keepdims=True)     # (1, 1)
    rce_part = jnp.sum(rce_row, axis=0, keepdims=True)     # (1, 1)
    partial = a_scale * nce_part + b_scale * rce_part      # (1, 1) f32

    # Lane-dense write-back: fill the whole (8, 128) output tile (unmasked vst).
    out_ref[...] = jnp.broadcast_to(partial, out_ref.shape)


def _row_tile(n, c, itemsize):
    """Row tile (multiple of 8), sized by a VMEM byte budget:
    2 pipeline buffers of the input block (at its HBM dtype) + ~4 live f32 [TN,C]
    intermediates, targeting 16 MiB (2x headroom under the 32 MiB scoped-VMEM
    default on v5e/v6e/v7x)."""
    if n <= 8:
        return n                                  # full-extent block is always legal
    budget = 16 << 20
    per_row = 2 * c * itemsize + 4 * c * 4 + 16   # input x2 buffers + f32 temps + labels
    tn = (budget // max(1, per_row)) // 8 * 8
    tn = max(8, min(16384, tn))
    # Keep >= 8 grid steps when the whole input is >= 2 MiB so v7x's two
    # TensorCores both get work and the pipeline has blocks to overlap;
    # each block then still carries >= 256 KiB of input.
    if n * c * itemsize >= (2 << 20):
        rows_for_8 = -(-n // 8)                   # ceil(n / 8)
        rows_for_8 = -(-rows_for_8 // 8) * 8      # round up to multiple of 8
        tn = min(tn, max(8, rows_for_8))
    tn = min(tn, -(-n // 8) * 8)                  # never exceed (8-padded) n
    return max(8, tn)


def nce_and_rce(pred, labels, *, alpha, beta, num_classes):
    """pred: [N, C] logits (f32 or bf16); labels: [N] int. Returns scalar f32 loss."""
    n, c = pred.shape
    assert c == num_classes
    labels_2d = labels.astype(jnp.int32).reshape(n, 1)

    tn = _row_tile(n, c, pred.dtype.itemsize)
    num_blocks = -(-n // tn)

    kernel = functools.partial(
        _nce_rce_kernel,
        a_scale=float(alpha) / float(n),
        b_scale=float(beta) / float(n),
        n_rows=n,
        row_tile=tn,
    )

    partials = pl.pallas_call(
        kernel,
        out_shape=jax.ShapeDtypeStruct((num_blocks * 8, 128), jnp.float32),
        grid=(num_blocks,),
        in_specs=[
            pl.BlockSpec((tn, c), lambda i: (i, 0)),   # pred rows, HBM dtype (no pre-upcast)
            pl.BlockSpec((tn, 1), lambda i: (i, 0)),   # labels
        ],
        out_specs=pl.BlockSpec((8, 128), lambda i: (i, 0)),
        compiler_params=pltpu.CompilerParams(
            dimension_semantics=("parallel",),         # row axis shards across TCs on v7x
        ),
    )(pred, labels_2d)

    # One scalar per block lives at sublane 0 / lane 0 of each (8,128) tile.
    return jnp.sum(partials[::8, 0])


def _reference(pred, labels, *, alpha, beta, num_classes):
    # Pure-JAX reference mirroring the PyTorch module exactly.
    logp = jax.nn.log_softmax(pred, axis=1)
    one_hot = jax.nn.one_hot(labels, num_classes, dtype=jnp.float32)
    nce = (-jnp.sum(one_hot * logp, axis=1)) / (-jnp.sum(logp, axis=1))
    nce = alpha * jnp.mean(nce)

    p = jax.nn.softmax(pred, axis=1)
    p = jnp.clip(p, 1e-07, 1.0)
    oh = jnp.clip(one_hot, 1e-4, 1.0)
    rce = -jnp.sum(p * jnp.log(oh), axis=1)
    rce = beta * jnp.mean(rce)
    return nce + rce


if __name__ == "__main__":
    key = jax.random.PRNGKey(0)
    k1, k2 = jax.random.split(key)

    N, C = 8, 16           # batch of 8 samples, 16 classes
    alpha, beta = 1.0, 0.1

    pred = jax.random.normal(k1, (N, C), dtype=jnp.float32) * 3.0
    labels = jax.random.randint(k2, (N,), 0, C, dtype=jnp.int32)

    loss = nce_and_rce(pred, labels, alpha=alpha, beta=beta, num_classes=C)
    loss = jax.block_until_ready(loss)

    ref = _reference(pred, labels, alpha=alpha, beta=beta, num_classes=C)
    assert jnp.allclose(loss, ref, rtol=1e-5, atol=1e-5), (loss, ref)

    print("KERNEL_OK")
</pallas_src>

<mosaic_0001>
module attributes {stable_mosaic.version = 11 : i64} {
  func.func @_nce_rce_kernel(%arg0: i32, %arg1: memref<8x16xf32, #tpu.memory_space<vmem>>, %arg2: memref<8x1xi32, #tpu.memory_space<vmem>>, %arg3: memref<8x128xf32, #tpu.memory_space<vmem>>) attributes {dimension_semantics = [#tpu.dimension_semantics<parallel>], iteration_bounds = array<i64: 1>, scalar_prefetch = 0 : i64, scratch_operands = 0 : i64, tpu.core_type = #tpu.core_type<tc>, window_params = [{transform_indices = @transform_0, window_bounds = array<i64: 8, 16>}, {transform_indices = @transform_1, window_bounds = array<i64: 8, 1>}, {transform_indices = @transform_2, window_bounds = array<i64: 8, 128>}]} {
    %c0 = arith.constant 0 : index
    %c0_0 = arith.constant 0 : index
    %0 = vector.load %arg1[%c0, %c0_0] : memref<8x16xf32, #tpu.memory_space<vmem>>, vector<8x16xf32>
    %c0_1 = arith.constant 0 : index
    %c0_2 = arith.constant 0 : index
    %1 = vector.load %arg2[%c0_1, %c0_2] : memref<8x1xi32, #tpu.memory_space<vmem>>, vector<8x1xi32>
    %2 = tpu.iota {dimensions = array<i32: 1>} : vector<1x16xi32>
    %3 = vector.broadcast %1 : vector<8x1xi32> to vector<8x16xi32>
    %4 = vector.broadcast %2 : vector<1x16xi32> to vector<8x16xi32>
    %5 = arith.cmpi eq, %3, %4 : vector<8x16xi32>
    %cst = arith.constant dense<0xFF800000> : vector<8xf32>
    %6 = vector.multi_reduction <maximumf>, %0, %cst [1] : vector<8x16xf32> to vector<8xf32>
    %7 = vector.shape_cast %6 : vector<8xf32> to vector<8x1xf32>
    %cst_3 = arith.constant dense<0.000000e+00> : vector<8xf32>
    %8 = vector.multi_reduction <add>, %0, %cst_3 [1] : vector<8x16xf32> to vector<8xf32>
    %9 = vector.shape_cast %8 : vector<8xf32> to vector<8x1xf32>
    %cst_4 = arith.constant 0.000000e+00 : f32
    %10 = vector.broadcast %cst_4 : f32 to vector<8x16xf32>
    %11 = arith.select %5, %0, %10 : vector<8x16xi1>, vector<8x16xf32>
    %cst_5 = arith.constant dense<0.000000e+00> : vector<8xf32>
    %12 = vector.multi_reduction <add>, %11, %cst_5 [1] : vector<8x16xf32> to vector<8xf32>
    %13 = vector.shape_cast %12 : vector<8xf32> to vector<8x1xf32>
    %14 = vector.broadcast %7 : vector<8x1xf32> to vector<8x16xf32>
    %15 = arith.subf %0, %14 : vector<8x16xf32>
    %16 = math.exp %15 : vector<8x16xf32>
    %cst_6 = arith.constant dense<0.000000e+00> : vector<8xf32>
    %17 = vector.multi_reduction <add>, %16, %cst_6 [1] : vector<8x16xf32> to vector<8xf32>
    %18 = vector.shape_cast %17 : vector<8xf32> to vector<8x1xf32>
    %19 = math.log %18 : vector<8x1xf32>
    %20 = arith.addf %7, %19 : vector<8x1xf32>
    %21 = arith.subf %20, %13 : vector<8x1xf32>
    %cst_7 = arith.constant 1.600000e+01 : f32
    %22 = vector.broadcast %cst_7 : f32 to vector<8x1xf32>
    %23 = arith.mulf %22, %20 : vector<8x1xf32>
    %24 = arith.subf %23, %9 : vector<8x1xf32>
    %25 = arith.divf %21, %24 : vector<8x1xf32>
    %26 = tpu.reciprocal %18 : vector<8x1xf32> -> vector<8x1xf32>
    %cst_8 = arith.constant 1.000000e-07 : f32
    %27 = vector.broadcast %cst_8 : f32 to vector<8x1xf32>
    %28 = arith.mulf %27, %18 : vector<8x1xf32>
    %29 = vector.broadcast %28 : vector<8x1xf32> to vector<8x16xf32>
    %30 = arith.maximumf %16, %29 : vector<8x16xf32>
    %cst_9 = arith.constant dense<0.000000e+00> : vector<8xf32>
    %31 = vector.multi_reduction <add>, %30, %cst_9 [1] : vector<8x16xf32> to vector<8xf32>
    %32 = vector.shape_cast %31 : vector<8xf32> to vector<8x1xf32>
    %33 = arith.mulf %32, %26 : vector<8x1xf32>
    %cst_10 = arith.constant 0.000000e+00 : f32
    %34 = vector.broadcast %cst_10 : f32 to vector<8x1xf32>
    %35 = arith.subf %34, %21 : vector<8x1xf32>
    %36 = math.exp %35 : vector<8x1xf32>
    %cst_11 = arith.constant 1.000000e-07 : f32
    %37 = vector.broadcast %cst_11 : f32 to vector<8x1xf32>
    %38 = arith.maximumf %36, %37 : vector<8x1xf32>
    %39 = arith.subf %33, %38 : vector<8x1xf32>
    %cst_12 = arith.constant 9.21034049 : f32
    %40 = vector.broadcast %cst_12 : f32 to vector<8x1xf32>
    %41 = arith.mulf %40, %39 : vector<8x1xf32>
    %cst_13 = arith.constant dense<0.000000e+00> : vector<1xf32>
    %42 = vector.multi_reduction <add>, %25, %cst_13 [0] : vector<8x1xf32> to vector<1xf32>
    %43 = vector.shape_cast %42 : vector<1xf32> to vector<1x1xf32>
    %cst_14 = arith.constant dense<0.000000e+00> : vector<1xf32>
    %44 = vector.multi_reduction <add>, %41, %cst_14 [0] : vector<8x1xf32> to vector<1xf32>
    %45 = vector.shape_cast %44 : vector<1xf32> to vector<1x1xf32>
    %cst_15 = arith.constant 1.250000e-01 : f32
    %46 = vector.broadcast %cst_15 : f32 to vector<1x1xf32>
    %47 = arith.mulf %46, %43 : vector<1x1xf32>
    %cst_16 = arith.constant 1.250000e-02 : f32
    %48 = vector.broadcast %cst_16 : f32 to vector<1x1xf32>
    %49 = arith.mulf %48, %45 : vector<1x1xf32>
    %50 = arith.addf %47, %49 : vector<1x1xf32>
    %51 = vector.shape_cast %50 : vector<1x1xf32> to vector<1x1xf32>
    %52 = vector.broadcast %51 : vector<1x1xf32> to vector<8x128xf32>
    %c0_17 = arith.constant 0 : index
    %c0_18 = arith.constant 0 : index
    %53 = vector.load %arg3[%c0_17, %c0_18] : memref<8x128xf32, #tpu.memory_space<vmem>>, vector<8x128xf32>
    tpu.vector_store %arg3[%c0_17, %c0_18], %52 {strides = array<i32>} : memref<8x128xf32, #tpu.memory_space<vmem>>, vector<8x128xf32>,
    return
  }
  func.func @transform_0(%arg0: i32) -> (i32, i32) {
    %c0_i32 = arith.constant 0 : i32
    %c0_i32_0 = arith.constant 0 : i32
    return %arg0, %c0_i32 : i32, i32
  }
  func.func @transform_1(%arg0: i32) -> (i32, i32) {
    %c0_i32 = arith.constant 0 : i32
    %c0_i32_0 = arith.constant 0 : i32
    return %arg0, %c0_i32 : i32, i32
  }
  func.func @transform_2(%arg0: i32) -> (i32, i32) {
    %c0_i32 = arith.constant 0 : i32
    %c0_i32_0 = arith.constant 0 : i32
    return %arg0, %c0_i32 : i32, i32
  }
}

</mosaic_0001>

<bundles_post_ra>
// kernel: tpu_custom_call.1
= control target key start
LH: loop header
LB: loop body
LE: loop exit
PB: predicated region body
PF: predicated region fallthrough
CT: control target
= control target key end

     0   :  { %vm20_vm0 = vcmask 130048   ;;  %s154_s0 = inlined_call_operand.vmem [shape: f32[8,16], index: 0, kind: input, shape index: {}]   ;;  %s155_s1 = inlined_call_operand.vmem [shape: s32[8,1], index: 1, kind: input, shape index: {}]   ;;  %s156_s2 = inlined_call_operand.hbm [shape: f32[8,128], index: 2, kind: output, shape index: {}]  }
   0x1   :  { %v12_v0 = vld [vmem:[%s154_s0] sm:$0xff] }
   0x2   :  { %7 = vsyncpa [#allocation3], 0  ;;  %v21_v1 = vsel %vm20_vm0, %v12_v0, -inf  ;;  %v123_v2 = vmov 0   ;;  %v13_v3 = vld [vmem:[%s155_s1] sm:$0xff]  ;;  %v14_v7 = vlaneseq  ;;  %v24_v14 = vsel %vm20_vm0, %v12_v0, 0.0 }
   0x3   :  { %90 = vset.pattern.permute.xlu0 %v123_v2  ;;  %s124_s0 = smov [#allocation2]  }
   0x4   :  { %22 = vmax.xlane.f32.xlu0 %v21_v1  ;;  %v15_v8 = vand.u32 127, %v14_v7  ;;  %s80_s1 = sshll.u32 %s124_s0, 4  ;;  %s81_s1 = int_to_ptr.vmem [resolvable:$true] %s80_s1 }
   0x5   :  { %s101_s13 = scalar_lea.vmem %s81_s1, 128  ;;  %p106_p1 = scmp.lt.s32.totalorder %s81_s1, %s81_s1 }
   0x6   :  { %p102_p0 = scmp.ne.s32.totalorder %s81_s1, %s101_s13  ;;  %p107_p2 = scmp.lt.s32.totalorder %s101_s13, %s101_s13 }
   0x8   :  { %p108_p3 = por %p107_p2, %p106_p1 }
   0xa   :  { %p109_p4 = pnand %p108_p3, %p102_p0 }
  0x1a   :  { %17 = vperm.xlu0 %90, %v13_v3  }
  0x8d   :  { %v23_v4 = vpop.xlane.xlu0 %22 }
  0x8e   :  { %v31_v5 = vsub.f32 %v12_v0, %v23_v4 }
  0x90   :  { %v32_v6 = vmul.f32 1.442695, %v31_v5 }
  0x92   :  { %91 = vpow2.f32 %v32_v6 }
  0x95   :  { %v18_v9 = vpop.permute.xlu0 %17 }
  0x96   :  { %vm19_vm1 = vcmp.eq.s32.totalorder %v18_v9, %v15_v8 }
  0x97   :  { %v27_v11 = vsel %vm19_vm1, %v12_v0, 0.0 }
  0x98   :  { %v28_v13 = vsel %vm20_vm0, %v27_v11, 0.0 }
  0x9f   :  { %v92_v10 = vpop.eup %91 }
  0xa0   :  { %v34_v12 = vsel %vm20_vm0, %v92_v10, 0.0 }
  0xa1   :  { %35 = vadd.xlane.f32.xlu1 %v34_v12 }
  0xa5   :  { %29 = vadd.xlane.f32.xlu1 %v28_v13 }
  0xa9   :  { %25 = vadd.xlane.f32.xlu1 %v24_v14 }
 0x12a   :  { %v36_v15 = vpop.xlane.xlu1 %35 }
 0x12b   :  { %v46_v16 = vmul.f32 1e-07, %v36_v15  ;;  %93 = vlog2.f32 %v36_v15 }
 0x12d   :  { %v47_v17 = vmax.f32 %v92_v10, %v46_v16 }
 0x12e   :  { %v30_v21 = vpop.xlane.xlu1 %29 }
 0x12f   :  { %v48_v18 = vsel %vm20_vm0, %v47_v17, 0.0 }
 0x130   :  { %49 = vadd.xlane.f32.xlu1 %v48_v18 }
 0x132   :  { %v26_v24 = vpop.xlane.xlu1 %25 }
 0x138   :  { %v94_v19 = vpop.eup %93 }
 0x139   :  { %v38_v20 = vmul.f32 0.6931472, %v94_v19 }
 0x13b   :  { %v39_v22 = vadd.f32 %v38_v20, %v23_v4 }
 0x13d   :  { %v41_v23 = vmul.f32 16.0, %v39_v22  ;;  %v40_v26 = vsub.f32 %v39_v22, %v30_v21 }
 0x13f   :  { %v42_v25 = vsub.f32 %v41_v23, %v26_v24  ;;  %v52_v27 = vsub.f32 0.0, %v40_v26 }
 0x141   :  { %95 = vrcp.f32 %v42_v25  ;;  %v53_v28 = vmul.f32 1.442695, %v52_v27 }
 0x143   :  { %97 = vpow2.f32 %v53_v28 }
 0x144   :  { %99 = vrcp.f32 %v36_v15 }
 0x14e   :  { %v96_v29 = vpop.eup %95 }
 0x14f   :  { %v44_v30 = vmul.f32 %v96_v29, %v40_v26 }
 0x150   :  { %v98_v32 = vpop.eup %97 }
 0x151   :  { %v58_v31 = vrot.slane %v44_v30, 4  ;;  %v100_v34 = vpop.eup %99  ;;  %v55_v36 = vmax.f32 %v98_v32, 1e-07 }
 0x153   :  { %v59_v33 = vadd.f32 %v58_v31, %v44_v30 }
 0x155   :  { %v60_v39 = vrot.slane %v59_v33, 2 }
 0x157   :  { %v61_v42 = vadd.f32 %v60_v39, %v59_v33 }
 0x159   :  { %v62_v45 = vrot.slane %v61_v42, 1 }
 0x15b   :  { %v63_v47 = vadd.f32 %v62_v45, %v61_v42 }
 0x15d   :  { %v70_v50 = vmul.f32 0.125, %v63_v47 }
 0x1b9   :  { %v50_v35 = vpop.xlane.xlu1 %49 }
 0x1ba   :  { %v51_v37 = vmul.f32 %v100_v34, %v50_v35 }
 0x1bc   :  { %v56_v38 = vsub.f32 %v51_v37, %v55_v36 }
 0x1be   :  { %v57_v40 = vmul.f32 9.2103405, %v56_v38 }
 0x1c0   :  { %v64_v41 = vrot.slane %v57_v40, 4 }
 0x1c2   :  { %v65_v43 = vadd.f32 %v64_v41, %v57_v40 }
 0x1c4   :  { %v66_v44 = vrot.slane %v65_v43, 2 }
 0x1c6   :  { %v67_v46 = vadd.f32 %v66_v44, %v65_v43 }
 0x1c8   :  { %v68_v48 = vrot.slane %v67_v46, 1 }
 0x1ca   :  { %v69_v49 = vadd.f32 %v68_v48, %v67_v46 }
 0x1cc   :  { %v71_v51 = vmul.f32 0.0125, %v69_v49 }
 0x1ce   :  { %v72_v52 = vadd.f32 %v71_v51, %v70_v50 }
 0x1d0   :  { %73 = vst [vmem:[#allocation2] sm:$0xff] %v72_v52 }
 0x1d1   :  { %112 = shalt.err (!%p109_p4)
}
 0x1d2   :  { %83 = dma.vmem_to_hbm [thread:$0]  %s81_s1, 128, %s156_s2, [#allocation3]  }
 0x1d3   :  { %121 = dma.done.wait [#allocation3], 128  }
 0x1d4   :  { %122 = vsyncadd [#allocation3], 4294967168 }
 0x1d5   :  { %87 = vsyncpa [#allocation3], 1 }

</bundles_post_ra>
